<compile_context>
chip_gen: v7x
topology: tpu7x:2x2x1
jax: 0.10.0
libtpu: 0.0.40
codegen_flags: <defaults>
</compile_context>

<pallas_src>
import jax
import jax.numpy as jnp
from jax.experimental import pallas as pl
from jax.experimental.pallas import tpu as pltpu


# ---------------- Pallas kernels ----------------

def gram_stats_kernel(x_ref, g_ref, s_ref):
    """Accumulate the input Gram matrix and per-channel pixel sums per image.

    x_ref : (1, Cin, T)   input pixels (channels on sublanes, pixels on lanes)
    g_ref : (1, Cin, Cin) running sum_p x[:,p] x[:,p]^T   (accumulated over tiles)
    s_ref : (1, Cin, 1)   running sum_p x[:,p]
    """
    @pl.when(pl.program_id(1) == 0)
    def _():
        g_ref[0] = jnp.zeros_like(g_ref[0])
        s_ref[0] = jnp.zeros_like(s_ref[0])

    x = x_ref[0]
    g_ref[0] += jax.lax.dot_general(
        x, x, (((1,), (1,)), ((), ())), preferred_element_type=jnp.float32)
    s_ref[0] += jnp.sum(x, axis=1, keepdims=True)


def conv_bn_lrelu_fused_kernel(x_ref, wts_ref, shift_ref, o_ref):
    """y = wts @ x, + shift, LeakyReLU(0.2), written directly as (Cout, 2R, 2W).

    wts rows are phase-major: row = (kh*2 + kw)*Cout + co, BN scale pre-folded.
    """
    cout = o_ref.shape[1]
    r = o_ref.shape[2] // 2
    w = o_ref.shape[3] // 2
    y = jnp.dot(wts_ref[...], x_ref[0], preferred_element_type=jnp.float32)
    z = y + shift_ref[...]                       # (C4, T), broadcast over lanes
    z = jnp.where(z >= 0, z, 0.2 * z)
    # (4*Cout, R*W) -> (kh, kw, co, r, w) -> (co, r, kh, w, kw) -> (Cout, 2R, 2W)
    z = z.reshape(2, 2, cout, r, w)
    z = jnp.transpose(z, (2, 3, 0, 4, 1))
    o_ref[0] = z.reshape(cout, 2 * r, 2 * w)


def conv_bn_lrelu_flat_kernel(x_ref, wts_ref, shift_ref, o_ref):
    """Fallback: lane-dense (C4, T) output; the phase interleave is done by XLA."""
    y = jnp.dot(wts_ref[...], x_ref[0], preferred_element_type=jnp.float32)
    z = y + shift_ref[...]
    o_ref[0] = jnp.where(z >= 0, z, 0.2 * z)


# ---------------- helpers ----------------

def _vmem_limit_bytes():
    cap = 64 * 1024 * 1024
    try:
        cap = int(pltpu.get_tpu_info().vmem_capacity_bytes)
    except Exception:
        pass
    # Leave headroom for Mosaic internal scratch and double buffers:
    # v7x (64 MiB/core) -> 48 MiB; v5e/v6e (128 MiB/core) -> 96 MiB.
    return min((cap * 3) // 4, 112 * 1024 * 1024)


def _round_up(v, m):
    return -(-v // m) * m


def _pick_rows(h, w, cin, cout, budget_bytes):
    """Input-image rows per tile.  T = R*W pixels; each tile emits a
    (Cout, 2R, 2W) output block.  R must keep every block (8,128)-legal."""
    c4 = 4 * cout

    def legal(r):
        # x / flat-out blocks need T % 128 == 0 (or T == HW, i.e. r == h);
        # fused out block needs 2R % 8 == 0 (or 2R == 2H).
        return r == h or (r % 4 == 0 and (r * w) % 128 == 0)

    def fits(r):
        t = r * w
        x_blk = 2 * _round_up(cin, 8) * _round_up(t, 128) * 4            # dbl-buffered
        o_blk = 2 * cout * _round_up(2 * r, 8) * _round_up(2 * w, 128) * 4
        tmp = 3 * _round_up(c4, 8) * _round_up(t, 128) * 4               # y/z + shuffle temps
        return x_blk + o_blk + tmp <= budget_bytes

    cands = [r for r in range(1, h + 1) if h % r == 0 and legal(r)]
    fitting = [r for r in cands if fits(r)]
    return max(fitting) if fitting else min(cands)


# ---------------- wrapper ----------------

def upsample_forward(x, weight, bias, gamma, beta, *, eps=1e-5):
    """x: (N, Cin, H, W) f32.  weight: (Cin, Cout, 2, 2) (ConvTranspose2d layout).
    Returns LeakyReLU(BatchNorm(ConvTranspose(x)), 0.2), shape (N, Cout, 2H, 2W)."""
    del bias  # per-channel constant cancels exactly under training-mode BatchNorm
    N, Cin, H, W = x.shape
    Cout = weight.shape[1]
    C4 = 4 * Cout
    HW = H * W

    xr = x.reshape(N, Cin, HW).astype(jnp.float32)          # natural layout, no transpose
    # phase-major weight rows: row = (kh*2 + kw)*Cout + co
    wt = jnp.transpose(weight.astype(jnp.float32), (2, 3, 1, 0)).reshape(C4, Cin)

    vmem_limit = _vmem_limit_bytes()
    R = _pick_rows(H, W, Cin, Cout, vmem_limit // 2)
    T = R * W
    nt = H // R
    grid = (N, nt)
    cparams_par = pltpu.CompilerParams(
        dimension_semantics=("parallel", "parallel"), vmem_limit_bytes=vmem_limit)
    cparams_acc = pltpu.CompilerParams(
        dimension_semantics=("parallel", "arbitrary"), vmem_limit_bytes=vmem_limit)

    # ---- pass 1: Cin x Cin Gram + per-channel sums, accumulated per image ----
    g_n, s_n = pl.pallas_call(
        gram_stats_kernel,
        out_shape=(jax.ShapeDtypeStruct((N, Cin, Cin), jnp.float32),
                   jax.ShapeDtypeStruct((N, Cin, 1), jnp.float32)),
        grid_spec=pltpu.PrefetchScalarGridSpec(
            num_scalar_prefetch=0, grid=grid,
            in_specs=[pl.BlockSpec((1, Cin, T), lambda n, t: (n, 0, t))],
            out_specs=[pl.BlockSpec((1, Cin, Cin), lambda n, t: (n, 0, 0)),
                       pl.BlockSpec((1, Cin, 1), lambda n, t: (n, 0, 0))]),
        compiler_params=cparams_acc,
    )(xr)

    # ---- fold training-mode BatchNorm into per-row scale/shift ----
    G = jnp.sum(g_n, axis=0)                     # (Cin, Cin): sum_{n,p} x x^T
    xsum = jnp.sum(s_n, axis=0)[:, 0]            # (Cin,)
    cnt = jnp.float32(N * HW * 4)                # per-channel count = N*(2H)*(2W)
    s_c4 = wt @ xsum                             # per conv-output-row sums
    ss_c4 = jnp.sum((wt @ G) * wt, axis=1)       # per conv-output-row sums of squares
    s_c = s_c4.reshape(4, Cout).sum(axis=0)      # fold the 4 (kh,kw) phases per channel
    ss_c = ss_c4.reshape(4, Cout).sum(axis=0)
    mean = s_c / cnt
    var = jnp.maximum(ss_c / cnt - mean * mean, 0.0)   # clamp: rounding can drive it < 0
    # TODO(synk): for very large batches / strongly offset activations, switch to
    # shifted-moment accumulation to reduce cancellation in E[y^2] - E[y]^2.
    scale = gamma.astype(jnp.float32) / jnp.sqrt(var + eps)
    shift = beta.astype(jnp.float32) - mean * scale
    scale_col = jnp.tile(scale, 4)[:, None]      # row (p*Cout + c) -> scale[c]
    shift_col = jnp.tile(shift, 4)[:, None]
    wt_scaled = wt * scale_col                   # fold BN scale into the matmul weight

    common_in_specs = [
        pl.BlockSpec((1, Cin, T), lambda n, t: (n, 0, t)),
        pl.BlockSpec((C4, Cin), lambda n, t: (0, 0)),
        pl.BlockSpec((C4, 1), lambda n, t: (0, 0)),
    ]

    # ---- pass 2 (preferred): conv + BN + LeakyReLU, phase interleave fused ----
    def _pass2_fused():
        return pl.pallas_call(
            conv_bn_lrelu_fused_kernel,
            out_shape=jax.ShapeDtypeStruct((N, Cout, 2 * H, 2 * W), jnp.float32),
            grid_spec=pltpu.PrefetchScalarGridSpec(
                num_scalar_prefetch=0, grid=grid,
                in_specs=common_in_specs,
                out_specs=pl.BlockSpec((1, Cout, 2 * R, 2 * W),
                                       lambda n, t: (n, 0, t, 0))),
            compiler_params=cparams_par,
        )(xr, wt_scaled, shift_col)

    # ---- pass 2 (fallback): lane-dense (N, C4, HW) output + XLA interleave ----
    def _pass2_fallback():
        flat = pl.pallas_call(
            conv_bn_lrelu_flat_kernel,
            out_shape=jax.ShapeDtypeStruct((N, C4, HW), jnp.float32),
            grid_spec=pltpu.PrefetchScalarGridSpec(
                num_scalar_prefetch=0, grid=grid,
                in_specs=common_in_specs,
                out_specs=pl.BlockSpec((1, C4, T), lambda n, t: (n, 0, t))),
            compiler_params=cparams_par,
        )(xr, wt_scaled, shift_col)
        out = flat.reshape(N, 2, 2, Cout, H, W)
        return jnp.transpose(out, (0, 3, 4, 1, 5, 2)).reshape(N, Cout, 2 * H, 2 * W)

    # The in-kernel (kh,kw) interleave removes a full HBM read+write of the
    # output-sized tensor; if Mosaic cannot lower the in-VMEM shuffle on some
    # backend, fall back to the validated lane-dense path.  (Note: this
    # try/except only catches lowering errors when called eagerly, not under jit.)
    try:
        return jax.block_until_ready(_pass2_fused())
    except Exception:
        return _pass2_fallback()


# ---------------- pure-JAX reference (PyTorch forward semantics) ----------------

def upsample_reference(x, weight, bias, gamma, beta, eps=1e-5):
    N, Cin, H, W = x.shape
    Cout = weight.shape[1]
    # ConvTranspose2d k=2, s=2, p=0: out[n,o,2h+k,2w+l] = sum_i x[n,i,h,w]*W[i,o,k,l] + b[o]
    y = jnp.einsum("nihw,iokl->nohkwl", x, weight, precision=jax.lax.Precision.HIGHEST)
    y = y.reshape(N, Cout, 2 * H, 2 * W) + bias[None, :, None, None]
    mean = y.mean(axis=(0, 2, 3), keepdims=True)
    var = y.var(axis=(0, 2, 3), keepdims=True)   # biased, as BN uses for normalization
    yn = (y - mean) / jnp.sqrt(var + eps)
    yn = yn * gamma[None, :, None, None] + beta[None, :, None, None]
    return jnp.where(yn >= 0, yn, 0.2 * yn)


if __name__ == "__main__":
    key = jax.random.PRNGKey(0)
    k_x, k_w, k_b, k_g, k_be = jax.random.split(key, 5)

    N, Cin, Cout, H, W = 2, 4, 8, 16, 16
    x = jax.random.normal(k_x, (N, Cin, H, W), dtype=jnp.float32)
    # ConvTranspose2d weight shape: (in_channels, out_channels, kH, kW)
    weight = 0.1 * jax.random.normal(k_w, (Cin, Cout, 2, 2), dtype=jnp.float32)
    bias = 0.1 * jax.random.normal(k_b, (Cout,), dtype=jnp.float32)
    gamma = 1.0 + 0.1 * jax.random.normal(k_g, (Cout,), dtype=jnp.float32)
    beta = 0.1 * jax.random.normal(k_be, (Cout,), dtype=jnp.float32)

    out = upsample_forward(x, weight, bias, gamma, beta)
    out = jax.block_until_ready(out)

    ref = upsample_reference(x, weight, bias, gamma, beta)
    assert out.shape == (N, Cout, 2 * H, 2 * W)
    assert jnp.allclose(out, ref, atol=1e-2, rtol=1e-2), "mismatch vs reference"

    print("KERNEL_OK")
</pallas_src>

<mosaic_0001>
module attributes {stable_mosaic.version = 11 : i64} {
  func.func @gram_stats_kernel(%arg0: i32, %arg1: i32, %arg2: memref<1x4x256xf32, #tpu.memory_space<vmem>>, %arg3: memref<1x4x4xf32, #tpu.memory_space<vmem>>, %arg4: memref<1x4x1xf32, #tpu.memory_space<vmem>>) attributes {dimension_semantics = [#tpu.dimension_semantics<parallel>, #tpu.dimension_semantics<arbitrary>], iteration_bounds = array<i64: 2, 1>, scalar_prefetch = 0 : i64, scratch_operands = 0 : i64, tpu.core_type = #tpu.core_type<tc>, window_params = [{transform_indices = @transform_0, window_bounds = array<i64: 1, 4, 256>}, {transform_indices = @transform_1, window_bounds = array<i64: 1, 4, 4>}, {transform_indices = @transform_2, window_bounds = array<i64: 1, 4, 1>}]} {
    %c0_i32 = arith.constant 0 : i32
    %0 = arith.cmpi eq, %arg1, %c0_i32 : i32
    %1 = arith.extui %0 : i1 to i32
    %c0_i32_0 = arith.constant 0 : i32
    %2 = arith.cmpi ne, %1, %c0_i32_0 : i32
    scf.if %2 {
      %cst_16 = arith.constant 0.000000e+00 : f32
      %20 = vector.broadcast %cst_16 : f32 to vector<4x4xf32>
      %c0_17 = arith.constant 0 : index
      %c0_18 = arith.constant 0 : index
      %c0_19 = arith.constant 0 : index
      %21 = vector.load %arg3[%c0_17, %c0_18, %c0_19] : memref<1x4x4xf32, #tpu.memory_space<vmem>>, vector<1x4x4xf32>
      %22 = vector.shape_cast %21 : vector<1x4x4xf32> to vector<4x4xf32>
      %23 = vector.shape_cast %20 : vector<4x4xf32> to vector<1x4x4xf32>
      tpu.vector_store %arg3[%c0_17, %c0_18, %c0_19], %23 {strides = array<i32>} : memref<1x4x4xf32, #tpu.memory_space<vmem>>, vector<1x4x4xf32>,
      %cst_20 = arith.constant 0.000000e+00 : f32
      %24 = vector.broadcast %cst_20 : f32 to vector<4x1xf32>
      %c0_21 = arith.constant 0 : index
      %c0_22 = arith.constant 0 : index
      %c0_23 = arith.constant 0 : index
      %25 = vector.load %arg4[%c0_21, %c0_22, %c0_23] : memref<1x4x1xf32, #tpu.memory_space<vmem>>, vector<1x4x1xf32>
      %26 = vector.shape_cast %25 : vector<1x4x1xf32> to vector<4x1xf32>
      %27 = vector.shape_cast %24 : vector<4x1xf32> to vector<1x4x1xf32>
      tpu.vector_store %arg4[%c0_21, %c0_22, %c0_23], %27 {strides = array<i32>} : memref<1x4x1xf32, #tpu.memory_space<vmem>>, vector<1x4x1xf32>,
    } else {
    }
    %c0 = arith.constant 0 : index
    %c0_1 = arith.constant 0 : index
    %c0_2 = arith.constant 0 : index
    %3 = vector.load %arg2[%c0, %c0_1, %c0_2] : memref<1x4x256xf32, #tpu.memory_space<vmem>>, vector<1x4x256xf32>
    %4 = vector.shape_cast %3 : vector<1x4x256xf32> to vector<4x256xf32>
    %c0_3 = arith.constant 0 : index
    %c0_4 = arith.constant 0 : index
    %c0_5 = arith.constant 0 : index
    %5 = vector.load %arg3[%c0_3, %c0_4, %c0_5] : memref<1x4x4xf32, #tpu.memory_space<vmem>>, vector<1x4x4xf32>
    %6 = vector.shape_cast %5 : vector<1x4x4xf32> to vector<4x4xf32>
    %cst = arith.constant dense<0.000000e+00> : vector<4x4xf32>
    %7 = tpu.matmul %4, %4, %cst {dimension_numbers = #tpu.dot_dimension_numbers<[1], [1], [0], [0], [0, 0, 1, 0], [], []>} : vector<4x256xf32>, vector<4x256xf32>, vector<4x4xf32> -> vector<4x4xf32>
    %8 = arith.addf %6, %7 : vector<4x4xf32>
    %c0_6 = arith.constant 0 : index
    %c0_7 = arith.constant 0 : index
    %c0_8 = arith.constant 0 : index
    %9 = vector.load %arg3[%c0_6, %c0_7, %c0_8] : memref<1x4x4xf32, #tpu.memory_space<vmem>>, vector<1x4x4xf32>
    %10 = vector.shape_cast %9 : vector<1x4x4xf32> to vector<4x4xf32>
    %11 = vector.shape_cast %8 : vector<4x4xf32> to vector<1x4x4xf32>
    tpu.vector_store %arg3[%c0_6, %c0_7, %c0_8], %11 {strides = array<i32>} : memref<1x4x4xf32, #tpu.memory_space<vmem>>, vector<1x4x4xf32>,
    %c0_9 = arith.constant 0 : index
    %c0_10 = arith.constant 0 : index
    %c0_11 = arith.constant 0 : index
    %12 = vector.load %arg4[%c0_9, %c0_10, %c0_11] : memref<1x4x1xf32, #tpu.memory_space<vmem>>, vector<1x4x1xf32>
    %13 = vector.shape_cast %12 : vector<1x4x1xf32> to vector<4x1xf32>
    %cst_12 = arith.constant dense<0.000000e+00> : vector<4xf32>
    %14 = vector.multi_reduction <add>, %4, %cst_12 [1] : vector<4x256xf32> to vector<4xf32>
    %15 = vector.shape_cast %14 : vector<4xf32> to vector<4x1xf32>
    %16 = arith.addf %13, %15 : vector<4x1xf32>
    %c0_13 = arith.constant 0 : index
    %c0_14 = arith.constant 0 : index
    %c0_15 = arith.constant 0 : index
    %17 = vector.load %arg4[%c0_13, %c0_14, %c0_15] : memref<1x4x1xf32, #tpu.memory_space<vmem>>, vector<1x4x1xf32>
    %18 = vector.shape_cast %17 : vector<1x4x1xf32> to vector<4x1xf32>
    %19 = vector.shape_cast %16 : vector<4x1xf32> to vector<1x4x1xf32>
    tpu.vector_store %arg4[%c0_13, %c0_14, %c0_15], %19 {strides = array<i32>} : memref<1x4x1xf32, #tpu.memory_space<vmem>>, vector<1x4x1xf32>,
    return
  }
  func.func @transform_0(%arg0: i32, %arg1: i32) -> (i32, i32, i32) {
    %c0_i32 = arith.constant 0 : i32
    %c0_i32_0 = arith.constant 0 : i32
    return %arg0, %c0_i32, %arg1 : i32, i32, i32
  }
  func.func @transform_1(%arg0: i32, %arg1: i32) -> (i32, i32, i32) {
    %c0_i32 = arith.constant 0 : i32
    %c0_i32_0 = arith.constant 0 : i32
    %c0_i32_1 = arith.constant 0 : i32
    return %arg0, %c0_i32, %c0_i32_0 : i32, i32, i32
  }
  func.func @transform_2(%arg0: i32, %arg1: i32) -> (i32, i32, i32) {
    %c0_i32 = arith.constant 0 : i32
    %c0_i32_0 = arith.constant 0 : i32
    %c0_i32_1 = arith.constant 0 : i32
    return %arg0, %c0_i32, %c0_i32_0 : i32, i32, i32
  }
}

</mosaic_0001>

<bundles_post_ra>
// kernel: tpu_custom_call.1
= control target key start
LH: loop header
LB: loop body
LE: loop exit
PB: predicated region body
PF: predicated region fallthrough
CT: control target
= control target key end

     0   :  { %8 = vsyncpa [#allocation3], 0  ;;  %s808_s0 = inlined_call_operand.hbm [shape: f32[2,4,256], index: 0, kind: input, shape index: {}]   ;;  %s809_s1 = inlined_call_operand.hbm [shape: f32[2,4,4], index: 1, kind: output, shape index: {0}]   ;;  %s810_s2 = inlined_call_operand.vmem [shape: f32[2,4,1], index: 2, kind: output, shape index: {1}]  }
   0x1   :  { %10 = vsyncpa [#allocation3 + $0x1], 0 }
   0x2   :  { %11 = vsyncpa [#allocation4], 0 }
   0x3   :  { %13 = vsyncpa [#allocation4 + $0x1], 0  ;;  %s622_s9 = smov 0   ;;  %s624_s10 = smov 0  }
   0x4   :  { %s626_s11 = smov 0   ;;  %s628_s12 = smov 0  }
   0x5   :  { %s630_s13 = smov 0   ;;  %s632_s14 = smov 0  }
   0x6 LB: > { %s410_s15 = sadd.s32 4294967295, %s602_s14   ;;  %s411_s16 = sadd.s32 4294967294, %s602_s14   ;;  %s602_s14 = sphi %s632_s14, %s19_s14   ;;  %s598_s13 = sphi %s630_s13, %s826_s13   ;;  %s594_s12 = sphi %s628_s12, %s825_s12   ;;  %s590_s11 = sphi %s626_s11, %s824_s11   ;;  %s586_s10 = sphi %s624_s10, %s823_s10   ;;  %s582_s9 = sphi %s622_s9, %s822_s9  }
   0x7   : > { %s31_s17 = sadd.s32 1, %s598_s13  ;;  %s40_s18 = sadd.s32 1, %s590_s11 }
   0x8   : > { %p33_p0 = scmp.ge.s32.totalorder %s31_s17, 2  ;;  %p47_p1 = scmp.ne.s32.totalorder %s590_s11, %s586_s10 }
   0x9   : > { %p48_p2 = scmp.eq.s32.totalorder %s602_s14, 0  ;;  %p53_p3 = scmp.ne.s32.totalorder %s586_s10, %s582_s9 }
   0xa   : > { %s828_s17 = smov (%p33_p0, %s31_s17), 0  ;;  %p54_p5 = scmp.eq.s32.totalorder %s410_s15, 0 }
   0xb   : > { %p663_p4 = por %p48_p2, %p47_p1  ;;  %s35_s20 = ssub.s32 %s598_s13, %s828_s17 }
   0xc   : > { %p77_p6 = scmp.eq.s32.totalorder %s410_s15, 1  ;;  %p38_p7 = scmp.eq.s32.totalorder %s35_s20, 0 }
   0xd   : > { %p669_p8 = por %p54_p5, %p53_p3  ;;  %p83_p10 = scmp.eq.s32.totalorder %s411_s16, 1 }
   0xe   : > { %p673_p9 = por %p77_p6, %p47_p1  ;;  %p438_p13 = scmp.lt.s32.totalorder %s602_s14, 2 }
   0xf   : > { %s678_s23 = scalar_select %p38_p7, %s590_s11, %s40_s18  }
  0x10   : > { %s814_s22 = scalar_select %p673_p9, 1, 0 }
  0x11   : > { %p680_p11 = por %p83_p10, %p53_p3  ;;  %s129_s25 = sand.u32 1, %s590_s11  }
  0x12   : > { %s414_s26 = sshll.u32 %s129_s25, 3  ;;  %s425_s27 = sshll.u32 %s598_s13, 7 }
  0x13   : > { %s815_s24 = scalar_select %p680_p11, 1, 0 }
  0x14   : > { %s691_s30 = scalar_lea.hbm %s808_s0, %s425_s27  ;;  %s133_s3 = scalar_lea.vmem [#allocation2], %s414_s26 }
  0x15   : > { %s143_s4 = sshll.u32 %s133_s3, 4  ;;  %p697_p0 = pnand %p438_p13, %p663_p4  ;;  %s693_s4 = int_to_ptr.vmem [resolvable:$true] %s143_s4 }
  0x16   : > { %s130_s6 = scalar_lea.sflag [#allocation3], %s129_s25  ;;  %s490_s7 = scalar_lea.hbm %s691_s30, 128 }
  0x17   : > { %p491_p3 = scmp.ne.s32.totalorder %s691_s30, %s490_s7  ;;  %p492_p5 = pneg %p697_p0 }
  0x18   : > { %s495_s16 = scalar_lea.hbm %s808_s0, 256  ;;  %p496_p4 = scmp.lt.u32.totalorder %s691_s30, %s808_s0 }
  0x19   : > { %p493_p6 = pnand %p492_p5, %p491_p3  ;;  %p497_p10 = scmp.lt.u32.totalorder %s495_s16, %s490_s7 }
  0x1a   : > { %p499_p12 = scmp.lt.u32.totalorder %s490_s7, %s691_s30 }
  0x1b   : > { %p494_p7 = pneg %p493_p6  ;;  %p498_p13 = por %p497_p10, %p496_p4 }
  0x1d   : > { %p500_p1 = por %p499_p12, %p498_p13 }
  0x1f   : > { %p501_p2 = pnand %p500_p1, %p494_p7 }
  0x21   : > { %504 = shalt.err (!%p501_p2)
}
  0x22   : > { %s505_s20 = scalar_lea.vmem %s693_s4, 128  ;;  %s604_s25 = smov [#allocation2]  }
  0x23   : > { %p506_p3 = scmp.ne.s32.totalorder %s693_s4, %s505_s20  ;;  %s510_s26 = sshll.u32 %s604_s25, 4  ;;  %s511_s26 = int_to_ptr.vmem [resolvable:$false] %s510_s26 }
  0x24   : > { %s512_s27 = scalar_lea.vmem %s511_s26, 256  ;;  %p513_p9 = scmp.lt.s32.totalorder %s693_s4, %s511_s26 }
  0x25   : > { %p508_p6 = pnand %p506_p3, %p492_p5  ;;  %p514_p4 = scmp.lt.s32.totalorder %s512_s27, %s505_s20 }
  0x27   : > { %p509_p11 = pneg %p508_p6  ;;  %p515_p10 = por %p514_p4, %p513_p9 }
  0x29   : > { %p516_p12 = pnand %p515_p10, %p509_p11 }
  0x2b   : > { %519 = shalt.err (!%p516_p12)
}
  0x2c   : > { %433 = dma.hbm_to_vmem [thread:$0]  (!%p697_p0), %s691_s30, 128, %s693_s4, %s130_s6  }
  0x2d   : > { %p817_p1 = scmp.lt.s32.totalorder %s602_s14, 3  ;;  %p818_p2 = scmp.ge.s32.totalorder %s602_s14, 1 }
  0x2f   : > { %p149_p5 = pnand %p818_p2, %p817_p1 }
  0x30   : > { %s733_s28 = sand.u32 (!%p149_p5), 1, %s586_s10  }
  0x31   : > { %152 = sbr.rel (%p149_p5) target bundleno = 292 (0x124), region = 24  ;;  %s418_s29 = sshll.u32 (!%p149_p5), %s733_s28, 3 }
  0x32   : > { %s155_s3 = scalar_lea.sflag (!%p149_p5), [#allocation3], %s733_s28  ;;  %s158_s7 = scalar_lea.vmem (!%p149_p5), [#allocation2], %s418_s29 }
  0x38   : > { %573 = dma.done.wait (%p669_p8), %s155_s3, 128  }
  0x39   : > { %575 = vsyncadd (%p669_p8), %s155_s3, 4294967168  ;;  %s419_s30 = sshll.u32 %s733_s28, 2  ;;  %vm192_vm0 = vcmask 27648   ;;  %v605_v0 = vmov 0.0   ;;  %vm275_vm1 = vcmask 1043456   ;;  %v196_v1 = vld [vmem:[%s158_s7] sm:$0xff] }
  0x3a   : > { %s742_s4 = scalar_lea.vmem [#allocation5], %s419_s30  ;;  %v199_v2 = vcombine.high %v196_v1, %v196_v1  ;;  %v276_v3 = vsel %vm275_vm1, %v196_v1, 0.0  ;;  %p184_p8 = scmp.lt.s32.totalorder %s594_s12, 1  ;;  %vm194_vm2 = vcmask 3072  }
  0x3b   : > { %193 = vst.msk [vmem:[%s742_s4] sm:$0xf] %vm192_vm0, %v605_v0  ;;  %s422_s16 = sshll.u32 %s594_s12, 6  ;;  %s302_s18 = sshll.u32 %s742_s4, 4  ;;  %s759_s18 = int_to_ptr.vmem [resolvable:$true] %s302_s18 }
  0x3c   : > { %201 = vmatprep.subr.mxu0 %v199_v2  ;;  %265 = vmatprep.mubr.f32.mxu0 %v199_v2  ;;  %v277_v4 = vsel %vm275_vm1, %v199_v2, 0.0  ;;  %s185_s21 = scalar_select %p184_p8, %s594_s12, 1 }
  0x3d   : > { %202 = vmatpush1.xpose.msra.mxu0 %v196_v1  ;;  %v278_v5 = vadd.f32 %v277_v4, %v276_v3  ;;  %s757_s25 = scalar_lea.hbm %s809_s1, %s422_s16  ;;  %s285_s26 = scalar_lea.sflag [#allocation4], %s733_s28 }
  0x3e   : > { %s420_s5 = sshll.u32 %s185_s21, 2  ;;  %s520_s27 = scalar_lea.vmem %s759_s18, 64 }
  0x3f   : > { %279 = vadd.xlane.f32.xlu0 %v278_v5  ;;  %s187_s15 = scalar_lea.vmem %s810_s2, %s420_s5  ;;  %p521_p9 = scmp.ne.s32.totalorder %s759_s18, %s520_s27 }
  0x40   : > { %266 = vmatmul.mubr.f32.vlgmr.msra.gmra.mrb[0].mxu0 %v196_v1  ;;  %195 = vst.msk [vmem:[%s187_s15] sm:$0xf] %vm194_vm2, %v605_v0  ;;  %p819_p11 = scmp.ne.s32.totalorder %s814_s22, 0  ;;  %s606_s12 = smov [#allocation5]  }
  0x41   : > { %s524_s29 = sshll.u32 %s606_s12, 4  ;;  %s525_s29 = int_to_ptr.vmem [resolvable:$false] %s524_s29 }
  0x42   : > { %v197_v9 = vld [vmem:[%s742_s4] sm:$0xf]  ;;  %p522_p0 = pnand %p521_p9, %p819_p11  ;;  %s526_s3 = scalar_lea.vmem %s525_s29, 128 }
  0x43   : > { %p527_p13 = scmp.lt.s32.totalorder %s759_s18, %s525_s29  ;;  %p528_p3 = scmp.lt.s32.totalorder %s526_s3, %s520_s27 }
  0x44   : > { %p523_p7 = pneg %p522_p0 }
  0x45   : > { %p529_p6 = por %p528_p3, %p527_p13 }
  0x47   : > { %v274_v6 = vld [vmem:[%s187_s15] sm:$0xf]  ;;  %p530_p4 = pnand %p529_p6, %p523_p7 }
  0xcc   : > { %v280_v7 = vpop.xlane.xlu0 %279 }
  0xcd   : > { %v281_v8 = vadd.f32 %v280_v7, %v274_v6 }
  0xcf   : > { %283 = vst.msk [vmem:[%s187_s15] sm:$0xf] %vm194_vm2, %v281_v8 }
 0x113   : > { %v267_v10 = vpop.f32.mrb[0].mxu0 }
 0x114   : > { %v271_v11 = vadd.f32 %v267_v10, %v197_v9  ;;  %v269_v12 = vpop.f32.mrb[1].mxu0 }
 0x116   : > { %273 = vst.msk [vmem:[%s742_s4] sm:$0xf] %vm192_vm0, %v271_v11 }
 0x117   : > { %533 = shalt.err (!%p530_p4)
}
 0x118   : > { %s534_s28 = scalar_lea.hbm %s757_s25, 64  ;;  %s538_s4 = scalar_lea.hbm %s809_s1, 128 }
 0x119   : > { %p535_p10 = scmp.ne.s32.totalorder %s757_s25, %s534_s28  ;;  %p539_p2 = scmp.lt.u32.totalorder %s757_s25, %s809_s1 }
 0x11a   : > { %p540_p5 = scmp.lt.u32.totalorder %s538_s4, %s534_s28  ;;  %p542_p9 = scmp.lt.u32.totalorder %s534_s28, %s757_s25 }
 0x11b   : > { %p536_p12 = pnand %p535_p10, %p819_p11 }
 0x11c   : > { %p541_p8 = por %p540_p5, %p539_p2 }
 0x11d   : > { %p537_p1 = pneg %p536_p12 }
 0x11e   : > { %p543_p0 = por %p542_p9, %p541_p8 }
 0x120   : > { %p544_p7 = pnand %p543_p0, %p537_p1 }
 0x122   : > { %547 = shalt.err (!%p544_p7)
}
 0x123   : > { %428 = dma.vmem_to_hbm [thread:$0]  (%p819_p11), %s759_s18, 64, %s757_s25, %s285_s26  }
 0x124 PF: > { %s317_s6 = sand.u32 1, %s582_s9   ;;  %p820_p13 = scmp.ne.s32.totalorder %s815_s24, 0 }
 0x125   : > { %p821_p3 = scmp.ge.s32.totalorder %s602_s14, 2  ;;  %s318_s8 = scalar_lea.sflag [#allocation4], %s317_s6 }
 0x127   : > { %p435_p6 = pnand %p821_p3, %p820_p13 }
 0x129   : > { %577 = dma.done.wait (!%p435_p6), %s318_s8, 64  }
 0x12a   : > { %579 = vsyncadd (!%p435_p6), %s318_s8, 4294967232  ;;  %s19_s14 = sadd.s32 1, %s602_s14   ;;  %s822_s9 = smov %s586_s10 }
 0x12b   : > { %p16_p4 = scmp.ge.s32.totalorder %s19_s14, 4   ;;  %s823_s10 = smov %s590_s11 }
 0x12c   : > { %s824_s11 = smov %s678_s23  ;;  %s825_s12 = smov %s598_s13 }
 0x12d   : > { %s826_s13 = smov %s828_s17  ;;  %18 = sbr.rel (!%p16_p4) target bundleno = 6 (0x6), region = 85 }
 0x134   :  { %330 = vsyncpa [#allocation3], 1 }
 0x135   :  { %332 = vsyncpa [#allocation3 + $0x1], 1 }
 0x136   :  { %333 = vsyncpa [#allocation4], 1 }
 0x137   :  { %335 = vsyncpa [#allocation4 + $0x1], 1 }

</bundles_post_ra>
